<compile_context>
chip_gen: v6e
topology: v6e:2x2x1
jax: 0.10.0
libtpu: 0.0.40
codegen_flags: <defaults>
</compile_context>

<pallas_src>
import jax
import jax.numpy as jnp
from jax import lax
from jax.experimental import pallas as pl
from jax.experimental.pallas import tpu as pltpu

_LANE = 128
_SUBLANE = 8
_VMEM_BUDGET = 40 * 1024 * 1024      # conservative: leaves headroom under v7x's 64 MiB


def _round_up(x, m):
    return ((x + m - 1) // m) * m


def mlp_kernel(x_ref, w1_ref, w2_ref, w3_ref, misc_ref, o_ref):
    """Fused 4-layer MLP on transposed activations (features, tile_b).

    x_ref   : (tile_b, D) f32   raw batch-major input block (cast to bf16 in-kernel)
    w1_ref  : (64, D)  bf16     PyTorch (out, in) layout
    w2_ref  : (32, 64) bf16
    w3_ref  : (16, 32) bf16
    misc_ref: (64, 8)  f32      packed [b1 | b2 | b3 | w4col | b4] (zero padded)
    o_ref   : (1, tile_b) f32   lane-dense logits slab (batch in lanes)
    """
    x_bf = x_ref[...].astype(jnp.bfloat16)
    misc = misc_ref[...]
    b1 = misc[:, 0:1]        # (64, 1)
    b2 = misc[:32, 1:2]      # (32, 1)
    b3 = misc[:16, 2:3]      # (16, 1)
    w4c = misc[:16, 3:4]     # (16, 1) fc4 weight as a column (VPU path)
    b4 = misc[0:1, 4:5]      # (1, 1)

    # fc1 + ReLU: contract the shared D axis of (64, D) x (tile_b, D) -> (64, tile_b).
    # Batch lands in lanes; MXU takes bf16 inputs, accumulation stays f32.
    h1 = lax.dot_general(w1_ref[...], x_bf, (((1,), (1,)), ((), ())),
                         preferred_element_type=jnp.float32)
    h1 = jnp.maximum(h1 + b1, 0.0)
    # dropout (eval mode) == identity
    # fc2 + ReLU
    h2 = jnp.dot(w2_ref[...], h1.astype(jnp.bfloat16),
                 preferred_element_type=jnp.float32)
    h2 = jnp.maximum(h2 + b2, 0.0)
    # dropout (eval mode) == identity
    # fc3 + ReLU
    h3 = jnp.dot(w3_ref[...], h2.astype(jnp.bfloat16),
                 preferred_element_type=jnp.float32)
    h3 = jnp.maximum(h3 + b3, 0.0)
    # fc4 (16 -> 1): VPU multiply + XLU sublane reduce -> already lane-dense (1, tile_b).
    logits = jnp.sum(w4c * h3, axis=0, keepdims=True) + b4
    o_ref[...] = logits.astype(o_ref.dtype)


def _vmem_bytes_estimate(tb, d):
    """Rough per-step VMEM footprint (double-buffered I/O + f32/bf16 temporaries)."""
    d_pad = _round_up(max(d, 1), _LANE)
    x_in = 2 * tb * d_pad * 4              # double-buffered fp32 x tiles
    x_bf = tb * d_pad * 2                  # in-kernel bf16 cast of x
    acts = tb * (64 + 32 + 16) * 4         # h1..h3 fp32
    acts_bf = tb * (64 + 32) * 2           # bf16 casts feeding fc2/fc3
    out = 2 * _SUBLANE * tb * 4            # double-buffered (1, tb) output slab
    wts = (64 * d_pad + 32 * _LANE + 16 * _LANE) * 2 + 64 * _LANE * 4
    return x_in + x_bf + acts + acts_bf + out + wts


def _choose_tile(batch, tile_b, d):
    """Lane-dense batch tile; >= 2 grid steps for large batches (keeps both v7x TCs busy)."""
    if batch < 2 * _LANE:
        return batch                       # block == full array (exempt from (8,128) rule)
    half = -(-batch // 2)                  # ceil(batch / 2)
    tb = min(_round_up(tile_b, _LANE), _round_up(half, _LANE))
    tb = max(tb, _LANE)
    while tb > _LANE and _vmem_bytes_estimate(tb, d) > _VMEM_BUDGET:
        tb = max(_round_up(tb // 2, _LANE), _LANE)
    return tb


def mlp_forward(x, params, *, tile_b=4096):
    """x: (B, input_dim) float32.  params: PyTorch-layout weights/biases (see init_params).

    Returns logits of shape (B, 1), matching Net.forward in eval mode (dropout = identity).
    """
    batch, d = x.shape
    tb = _choose_tile(batch, tile_b, d)
    grid_b = pl.cdiv(batch, tb)

    # --- tiny one-off operand prep (weights only; x goes in untouched) -------------------
    w1 = params["w1"].astype(jnp.bfloat16)                  # (64, D)
    w2 = params["w2"].astype(jnp.bfloat16)                  # (32, 64)
    w3 = params["w3"].astype(jnp.bfloat16)                  # (16, 32)
    misc = jnp.zeros((64, 8), jnp.float32)
    misc = misc.at[:, 0].set(params["b1"].astype(jnp.float32))
    misc = misc.at[:32, 1].set(params["b2"].astype(jnp.float32))
    misc = misc.at[:16, 2].set(params["b3"].astype(jnp.float32))
    misc = misc.at[:16, 3].set(params["w4"].reshape(-1).astype(jnp.float32))
    misc = misc.at[0, 4].set(params["b4"].reshape(()).astype(jnp.float32))

    # Constant index_maps -> weights / bias slab stay resident in VMEM across grid steps.
    def whole(arr):
        return pl.BlockSpec(arr.shape, lambda i: (0,) * arr.ndim)

    vmem_bytes = int(min(max(2 * _vmem_bytes_estimate(tb, d) + (2 << 20), 16 << 20),
                         48 << 20))

    out = pl.pallas_call(
        mlp_kernel,
        out_shape=jax.ShapeDtypeStruct((1, batch), jnp.float32),
        grid_spec=pltpu.PrefetchScalarGridSpec(
            num_scalar_prefetch=0,
            grid=(grid_b,),
            in_specs=[
                pl.BlockSpec((tb, d), lambda i: (i, 0)),     # x: batch-major, ragged tail masked
                whole(w1), whole(w2), whole(w3), whole(misc),
            ],
            out_specs=pl.BlockSpec((1, tb), lambda i: (0, i)),   # lane-dense output slab
        ),
        compiler_params=pltpu.CompilerParams(
            dimension_semantics=("parallel",),    # batch tiles independent -> megacore shard
            vmem_limit_bytes=vmem_bytes),
    )(x.astype(jnp.float32), w1, w2, w3, misc)

    return out.T                                             # (B, 1)


def init_params(key, input_dim):
    """PyTorch nn.Linear-style params: W is (out, in), b is (out,), U(+-1/sqrt(fan_in))."""
    dims = [(input_dim, 64), (64, 32), (32, 16), (16, 1)]
    params = {}
    for idx, (fan_in, fan_out) in enumerate(dims, start=1):
        key, kw, kb = jax.random.split(key, 3)
        bound = 1.0 / jnp.sqrt(jnp.float32(fan_in))
        params[f"w{idx}"] = jax.random.uniform(
            kw, (fan_out, fan_in), jnp.float32, -bound, bound)
        params[f"b{idx}"] = jax.random.uniform(
            kb, (fan_out,), jnp.float32, -bound, bound)
    return params


def mlp_reference(x, params):
    """Pure-JAX fp32 reference (eval-mode dropout == identity)."""
    h = jnp.maximum(x @ params["w1"].T + params["b1"], 0.0)
    h = jnp.maximum(h @ params["w2"].T + params["b2"], 0.0)
    h = jnp.maximum(h @ params["w3"].T + params["b3"], 0.0)
    return h @ params["w4"].T + params["b4"]


if __name__ == "__main__":
    key = jax.random.PRNGKey(0)
    k_x, k_p, k_x2 = jax.random.split(key, 3)

    # Small demo: single grid step, block == full array.
    batch, input_dim = 16, 32
    x = jax.random.normal(k_x, (batch, input_dim), jnp.float32)
    params = init_params(k_p, input_dim)

    out = jax.block_until_ready(mlp_forward(x, params))
    ref = mlp_reference(x, params)
    assert out.shape == (batch, 1), out.shape
    # bf16 MXU inputs -> loosened tolerance vs fp32 reference.
    assert jnp.allclose(out, ref, atol=5e-2, rtol=5e-2), "mismatch vs reference (small)"

    # Tiled path: >= 2 parallel grid steps + ragged last tile handled by Pallas masking.
    batch2 = 1100
    x2 = jax.random.normal(k_x2, (batch2, input_dim), jnp.float32)
    out2 = jax.block_until_ready(mlp_forward(x2, params, tile_b=4096))
    ref2 = mlp_reference(x2, params)
    assert out2.shape == (batch2, 1), out2.shape
    assert jnp.allclose(out2, ref2, atol=5e-2, rtol=5e-2), "mismatch vs reference (tiled)"

    print("KERNEL_OK")
</pallas_src>

<mosaic_0001>
module attributes {stable_mosaic.version = 11 : i64} {
  func.func @mlp_kernel(%arg0: i32, %arg1: memref<16x32xf32, #tpu.memory_space<vmem>>, %arg2: memref<64x32xbf16, #tpu.memory_space<vmem>>, %arg3: memref<32x64xbf16, #tpu.memory_space<vmem>>, %arg4: memref<16x32xbf16, #tpu.memory_space<vmem>>, %arg5: memref<64x8xf32, #tpu.memory_space<vmem>>, %arg6: memref<1x16xf32, #tpu.memory_space<vmem>>) attributes {dimension_semantics = [#tpu.dimension_semantics<parallel>], iteration_bounds = array<i64: 1>, scalar_prefetch = 0 : i64, scratch_operands = 0 : i64, tpu.core_type = #tpu.core_type<tc>, window_params = [{transform_indices = @transform_0, window_bounds = array<i64: 16, 32>}, {pipeline_mode = #tpu.pipeline_mode<synchronous>, transform_indices = @transform_1, window_bounds = array<i64: 64, 32>}, {pipeline_mode = #tpu.pipeline_mode<synchronous>, transform_indices = @transform_2, window_bounds = array<i64: 32, 64>}, {pipeline_mode = #tpu.pipeline_mode<synchronous>, transform_indices = @transform_3, window_bounds = array<i64: 16, 32>}, {pipeline_mode = #tpu.pipeline_mode<synchronous>, transform_indices = @transform_4, window_bounds = array<i64: 64, 8>}, {transform_indices = @transform_5, window_bounds = array<i64: 1, 16>}]} {
    %c0 = arith.constant 0 : index
    %c0_0 = arith.constant 0 : index
    %0 = vector.load %arg1[%c0, %c0_0] : memref<16x32xf32, #tpu.memory_space<vmem>>, vector<16x32xf32>
    %1 = arith.truncf %0 : vector<16x32xf32> to vector<16x32xbf16>
    %c0_1 = arith.constant 0 : index
    %c0_2 = arith.constant 0 : index
    %2 = vector.load %arg5[%c0_1, %c0_2] : memref<64x8xf32, #tpu.memory_space<vmem>>, vector<64x8xf32>
    %3 = vector.extract_strided_slice %2 {offsets = [0, 0], sizes = [64, 1], strides = [1, 1]} : vector<64x8xf32> to vector<64x1xf32>
    %4 = vector.extract_strided_slice %2 {offsets = [0, 1], sizes = [32, 1], strides = [1, 1]} : vector<64x8xf32> to vector<32x1xf32>
    %5 = vector.extract_strided_slice %2 {offsets = [0, 2], sizes = [16, 1], strides = [1, 1]} : vector<64x8xf32> to vector<16x1xf32>
    %6 = vector.extract_strided_slice %2 {offsets = [0, 3], sizes = [16, 1], strides = [1, 1]} : vector<64x8xf32> to vector<16x1xf32>
    %7 = vector.extract_strided_slice %2 {offsets = [0, 4], sizes = [1, 1], strides = [1, 1]} : vector<64x8xf32> to vector<1x1xf32>
    %c0_3 = arith.constant 0 : index
    %c0_4 = arith.constant 0 : index
    %8 = vector.load %arg2[%c0_3, %c0_4] : memref<64x32xbf16, #tpu.memory_space<vmem>>, vector<64x32xbf16>
    %cst = arith.constant dense<0.000000e+00> : vector<64x16xf32>
    %9 = tpu.matmul %8, %1, %cst {dimension_numbers = #tpu.dot_dimension_numbers<[1], [1], [0], [0], [0, 0, 1, 0], [], []>} : vector<64x32xbf16>, vector<16x32xbf16>, vector<64x16xf32> -> vector<64x16xf32>
    %10 = vector.broadcast %3 : vector<64x1xf32> to vector<64x16xf32>
    %11 = arith.addf %9, %10 : vector<64x16xf32>
    %cst_5 = arith.constant 0.000000e+00 : f32
    %12 = vector.broadcast %cst_5 : f32 to vector<64x16xf32>
    %13 = arith.maximumf %11, %12 : vector<64x16xf32>
    %c0_6 = arith.constant 0 : index
    %c0_7 = arith.constant 0 : index
    %14 = vector.load %arg3[%c0_6, %c0_7] : memref<32x64xbf16, #tpu.memory_space<vmem>>, vector<32x64xbf16>
    %15 = arith.truncf %13 : vector<64x16xf32> to vector<64x16xbf16>
    %cst_8 = arith.constant dense<0.000000e+00> : vector<32x16xf32>
    %16 = tpu.matmul %14, %15, %cst_8 {dimension_numbers = #tpu.dot_dimension_numbers<[1], [0], [0], [1], [0, 0, 1, 1], [], []>} : vector<32x64xbf16>, vector<64x16xbf16>, vector<32x16xf32> -> vector<32x16xf32>
    %17 = vector.broadcast %4 : vector<32x1xf32> to vector<32x16xf32>
    %18 = arith.addf %16, %17 : vector<32x16xf32>
    %cst_9 = arith.constant 0.000000e+00 : f32
    %19 = vector.broadcast %cst_9 : f32 to vector<32x16xf32>
    %20 = arith.maximumf %18, %19 : vector<32x16xf32>
    %c0_10 = arith.constant 0 : index
    %c0_11 = arith.constant 0 : index
    %21 = vector.load %arg4[%c0_10, %c0_11] : memref<16x32xbf16, #tpu.memory_space<vmem>>, vector<16x32xbf16>
    %22 = arith.truncf %20 : vector<32x16xf32> to vector<32x16xbf16>
    %cst_12 = arith.constant dense<0.000000e+00> : vector<16x16xf32>
    %23 = tpu.matmul %21, %22, %cst_12 {dimension_numbers = #tpu.dot_dimension_numbers<[1], [0], [0], [1], [0, 0, 1, 1], [], []>} : vector<16x32xbf16>, vector<32x16xbf16>, vector<16x16xf32> -> vector<16x16xf32>
    %24 = vector.broadcast %5 : vector<16x1xf32> to vector<16x16xf32>
    %25 = arith.addf %23, %24 : vector<16x16xf32>
    %cst_13 = arith.constant 0.000000e+00 : f32
    %26 = vector.broadcast %cst_13 : f32 to vector<16x16xf32>
    %27 = arith.maximumf %25, %26 : vector<16x16xf32>
    %28 = vector.broadcast %6 : vector<16x1xf32> to vector<16x16xf32>
    %29 = arith.mulf %28, %27 : vector<16x16xf32>
    %cst_14 = arith.constant dense<0.000000e+00> : vector<16xf32>
    %30 = vector.multi_reduction <add>, %29, %cst_14 [0] : vector<16x16xf32> to vector<16xf32>
    %31 = vector.shape_cast %30 : vector<16xf32> to vector<1x16xf32>
    %32 = vector.broadcast %7 : vector<1x1xf32> to vector<1x16xf32>
    %33 = arith.addf %31, %32 : vector<1x16xf32>
    %c0_15 = arith.constant 0 : index
    %c0_16 = arith.constant 0 : index
    %34 = vector.load %arg6[%c0_15, %c0_16] : memref<1x16xf32, #tpu.memory_space<vmem>>, vector<1x16xf32>
    tpu.vector_store %arg6[%c0_15, %c0_16], %33 {strides = array<i32>} : memref<1x16xf32, #tpu.memory_space<vmem>>, vector<1x16xf32>,
    return
  }
  func.func @transform_0(%arg0: i32) -> (i32, i32) {
    %c0_i32 = arith.constant 0 : i32
    %c0_i32_0 = arith.constant 0 : i32
    return %arg0, %c0_i32 : i32, i32
  }
  func.func @transform_1(%arg0: i32) -> (i32, i32) {
    %c0_i32 = arith.constant 0 : i32
    %c0_i32_0 = arith.constant 0 : i32
    %c0_i32_1 = arith.constant 0 : i32
    return %c0_i32, %c0_i32_0 : i32, i32
  }
  func.func @transform_2(%arg0: i32) -> (i32, i32) {
    %c0_i32 = arith.constant 0 : i32
    %c0_i32_0 = arith.constant 0 : i32
    %c0_i32_1 = arith.constant 0 : i32
    return %c0_i32, %c0_i32_0 : i32, i32
  }
  func.func @transform_3(%arg0: i32) -> (i32, i32) {
    %c0_i32 = arith.constant 0 : i32
    %c0_i32_0 = arith.constant 0 : i32
    %c0_i32_1 = arith.constant 0 : i32
    return %c0_i32, %c0_i32_0 : i32, i32
  }
  func.func @transform_4(%arg0: i32) -> (i32, i32) {
    %c0_i32 = arith.constant 0 : i32
    %c0_i32_0 = arith.constant 0 : i32
    %c0_i32_1 = arith.constant 0 : i32
    return %c0_i32, %c0_i32_0 : i32, i32
  }
  func.func @transform_5(%arg0: i32) -> (i32, i32) {
    %c0_i32 = arith.constant 0 : i32
    %c0_i32_0 = arith.constant 0 : i32
    return %c0_i32, %arg0 : i32, i32
  }
}

</mosaic_0001>

<bundles_post_ra>
// kernel: tpu_custom_call.1
= control target key start
LH: loop header
LB: loop body
LE: loop exit
PB: predicated region body
PF: predicated region fallthrough
CT: control target
= control target key end

     0   :  { %vm101_vm0 = vcmask 261120   ;;  %v492_v4 = vmov 0   ;;  %s606_s0 = inlined_call_operand.vmem [shape: f32[16,32], index: 0, kind: input, shape index: {}]   ;;  %s607_s1 = inlined_call_operand.vmem [shape: bf16[64,32], index: 1, kind: input, shape index: {}]   ;;  %s608_s2 = inlined_call_operand.vmem [shape: bf16[32,64], index: 2, kind: input, shape index: {}]   ;;  %s609_s3 = inlined_call_operand.vmem [shape: bf16[16,32], index: 3, kind: input, shape index: {}]   ;;  %s610_s4 = inlined_call_operand.vmem [shape: f32[64,8], index: 4, kind: input, shape index: {}]   ;;  %s611_s5 = inlined_call_operand.hbm [shape: f32[1,16], index: 5, kind: output, shape index: {}]  }
   0x1   :  { %v22_v0 = vld [vmem:[%s606_s0] sm:$0xff]  ;;  %v23_v1 = vld [vmem:[%s606_s0 + $0x8] sm:$0xff]  ;;  %455 = vset.pattern.permute.xlu0 %v492_v4  ;;  %456 = vset.pattern.permute.xlu1 %v492_v4  ;;  %v31_v6 = vld [vmem:[%s610_s4 + $0x30] sm:$0xff] }
   0x2   :  { %v24_v2 = vpack.c.bf16 %v23_v1, %v22_v0  ;;  %v463_v3 = vld [vmem:[%s607_s1] sm:$0xff]   ;;  %73 = vperm.xlu0 %455, %v31_v6   ;;  %v464_v8 = vld [vmem:[%s607_s1 + $0x8] sm:$0xff]   ;;  %v465_v9 = vld [vmem:[%s607_s1 + $0x10] sm:$0xff]  }
   0x3   :  { %418 = vmatprep.mubr.msk.bf16.mxu0 %vm101_vm0, %v463_v3  ;;  %v29_v7 = vld [vmem:[%s610_s4 + $0x20] sm:$0xff]  ;;  %v32_v10 = vld [vmem:[%s610_s4 + $0x38] sm:$0xff]  ;;  %v30_v11 = vld [vmem:[%s610_s4 + $0x28] sm:$0xff] }
   0x4   :  { %446 = vmatprep.subr.msk.bf16.mxu0 %vm101_vm0, %v24_v2  ;;  %v115_v5 = vsel %vm101_vm0, %v24_v2, 0  ;;  %63 = vperm.xlu1 %456, %v29_v7  }
   0x5   :  { %417 = vmatpush3.bf16.xpose.msra.mxu0 %v115_v5 }
   0x6   :  { %78 = vperm.xlu0 %455, %v32_v10  }
   0x7   :  { %10 = vsyncpa [#allocation3], 0  ;;  %v27_v12 = vld [vmem:[%s610_s4 + $0x10] sm:$0xff]  ;;  %v28_v13 = vld [vmem:[%s610_s4 + $0x18] sm:$0xff]  ;;  %vm224_vm1 = vcmask 523264   ;;  %v493_v18 = vmov 1  }
   0x8   :  { %68 = vperm.xlu1 %456, %v30_v11   ;;  %v571_v14 = vld [vmem:[%s610_s4] sm:$0xff]  ;;  %v466_v15 = vld [vmem:[%s607_s1 + $0x18] sm:$0xff]   ;;  %v579_v16 = vld [vmem:[%s610_s4 + $0x8] sm:$0xff]  ;;  %v494_v56 = vmov 0.0   ;;  %vm495_vm2 = vmmov 0   ;;  %v496_v57 = vmov 2  }
   0x9   :  { %v467_v17 = vld [vmem:[%s608_s2] sm:$0xff]   ;;  %v468_v55 = vld [vmem:[%s608_s2 + $0x8] sm:$0xff]   ;;  %438 = vmatprep.subr.bf16.mxu0 %v494_v56  ;;  %v497_v58 = vmov 3   ;;  %v498_v59 = vmov 4   ;;  %vm357_vm3 = vcmask 130048   ;;  %vm372_vm4 = vcmask 122880  }
   0xa   :  { %53 = vperm.xlu0 %455, %v27_v12   ;;  %434 = vmatprep.mubr.msk.bf16.mxu1 %vm224_vm1, %v467_v17 }
   0xc   :  { %419 = vmatmul.mubr.msk.bf16.vlgmr.msra.gmra.mxu0 %vm101_vm0, %v464_v8  ;;  %58 = vperm.xlu1 %456, %v28_v13  }
   0xd   :  { %422 = vmatprep.mubr.msk.bf16.mxu0 %vm101_vm0, %v465_v9 }
   0xe   :  { %43 = vperm.xlu0 %455, %v571_v14  }
  0x10   :  { %48 = vperm.xlu1 %456, %v579_v16  }
  0x12   :  { %457 = vset.pattern.permute.xlu0 %v493_v18 }
  0x13   :  { %207 = vperm.xlu0 %457, %v27_v12  }
  0x14   :  { %423 = vmatmul.mubr.msk.bf16.gmra.mxu0 %vm101_vm0, %v466_v15  ;;  %458 = vset.pattern.permute.xlu1 %v493_v18 }
  0x15   :  { %211 = vperm.xlu1 %458, %v28_v13   ;;  %442 = vmatprep.mubr.msk.bf16.mxu0 %vm495_vm2, %v494_v56 }
  0x17   :  { %203 = vperm.xlu0 %457, %v579_v16  }
  0x19   :  { %199 = vperm.xlu1 %458, %v571_v14  }
  0x1b   :  { %460 = vset.pattern.permute.xlu0 %v496_v57 }
  0x1c   :  { %293 = vperm.xlu0 %460, %v579_v16  }
  0x1d   :  { %459 = vset.pattern.permute.xlu1 %v496_v57 }
  0x1e   :  { %289 = vperm.xlu1 %459, %v571_v14  }
  0x20   :  { %462 = vset.pattern.permute.xlu0 %v498_v59 }
  0x21   :  { %368 = vperm.xlu0 %462, %v571_v14  }
  0x22   :  { %461 = vset.pattern.permute.xlu1 %v497_v58 }
  0x23   :  { %348 = vperm.xlu1 %461, %v571_v14   ;;  %v469_v14 = vld [vmem:[%s609_s3] sm:$0xff]   ;;  %s499_s3 = smov [#allocation2]  }
  0x24   :  { %s380_s23 = sshll.u32 %s499_s3, 4  ;;  %s381_s23 = int_to_ptr.vmem [resolvable:$true] %s380_s23 }
  0x25   :  { %s470_s24 = scalar_lea.vmem %s381_s23, 16  ;;  %s474_s25 = scalar_lea.vmem %s381_s23, 32 }
  0x26   :  { %p471_p0 = scmp.ne.s32.totalorder %s381_s23, %s470_s24  ;;  %p475_p1 = scmp.lt.s32.totalorder %s381_s23, %s381_s23 }
  0x27   :  { %352 = vperm.xlu1 %461, %v579_v16   ;;  %p476_p2 = scmp.lt.s32.totalorder %s474_s25, %s470_s24 }
  0x29   :  { %p477_p3 = por %p476_p2, %p475_p1 }
  0x2b   :  { %p478_p4 = pnand %p477_p3, %p471_p0 }
  0x7d   :  { %v74_v20 = vpop.permute.xlu0 %73 }
  0x7f   :  { %v64_v19 = vpop.permute.xlu1 %63 }
  0x81   :  { %v79_v25 = vpop.permute.xlu0 %78 }
  0x83   :  { %v69_v23 = vpop.permute.xlu1 %68 }
  0x85   :  { %v54_v31 = vpop.permute.xlu0 %53 }
  0x87   :  { %v59_v28 = vpop.permute.xlu1 %58 }
  0x89   :  { %v44_v45 = vpop.permute.xlu0 %43 }
  0x8b   :  { %v49_v40 = vpop.permute.xlu1 %48 }
  0x8e   :  { %v208_v61 = vpop.permute.xlu0 %207 }
  0x90   :  { %v212_v60 = vpop.permute.xlu1 %211 }
  0x92   :  { %v204_v4 = vpop.permute.xlu0 %203 }
  0x94   :  { %v200_v1 = vpop.permute.xlu1 %199 }
  0x99   :  { %v290_v15 = vpop.permute.xlu1 %289 }
  0x9e   :  { %v349_v18 = vpop.permute.xlu1 %348 }
  0xcc   :  { %v420_v21 = vpop.f32.mrf.mxu0 }
  0xcd   :  { %v160_v41 = vadd.f32 %v420_v21, %v54_v31 }
  0xce   :  { %v151_v22 = vpop.f32.mrf.mxu0 }
  0xcf   :  { %v184_v49 = vmax.f32 %v160_v41, 0.0  ;;  %v152_v50 = vadd.f32 %v151_v22, %v44_v45 }
  0xd0   :  { %v421_v24 = vpop.f32.mrf.mxu0 }
  0xd1   :  { %v163_v36 = vadd.f32 %v421_v24, %v59_v28  ;;  %v182_v53 = vmax.f32 %v152_v50, 0.0 }
  0xd2   :  { %v154_v26 = vpop.f32.mrf.mxu0 }
  0xd3   :  { %v185_v46 = vmax.f32 %v163_v36, 0.0  ;;  %v155_v47 = vadd.f32 %v154_v26, %v49_v40 }
  0xd4   :  { %v424_v27 = vpop.f32.mrf.mxu0 }
  0xd5   :  { %v176_v30 = vadd.f32 %v424_v27, %v74_v20  ;;  %v195_v51 = vpack.c.bf16 %v185_v46, %v184_v49  ;;  %v183_v52 = vmax.f32 %v155_v47, 0.0  ;;  %v294_v20 = vpop.permute.xlu0 %293  ;;  %v353_v27 = vpop.permute.xlu1 %352 }
  0xd6   :  { %v167_v29 = vpop.f32.mrf.mxu0 }
  0xd7   :  { %v168_v33 = vadd.f32 %v167_v29, %v64_v19  ;;  %v188_v37 = vmax.f32 %v176_v30, 0.0  ;;  %v194_v54 = vpack.c.bf16 %v183_v52, %v182_v53 }
  0xd8   :  { %v425_v32 = vpop.f32.mrf.mxu0 }
  0xd9   :  { %v179_v34 = vadd.f32 %v425_v32, %v79_v25  ;;  %v186_v42 = vmax.f32 %v168_v33, 0.0 }
  0xda   :  { %v170_v35 = vpop.f32.mrf.mxu0 }
  0xdb   :  { %v189_v38 = vmax.f32 %v179_v34, 0.0  ;;  %v171_v39 = vadd.f32 %v170_v35, %v69_v23 }
  0xdd   :  { %v187_v43 = vmax.f32 %v171_v39, 0.0  ;;  %v197_v44 = vpack.c.bf16 %v189_v38, %v188_v37  ;;  %v369_v37 = vpop.permute.xlu0 %368 }
  0xdf   :  { %v196_v48 = vpack.c.bf16 %v187_v43, %v186_v42  ;;  %426 = vmatprep.subr.bf16.mxu1 %v197_v44 }
  0xe0   :  { %427 = vmatpush3.bf16.msra.mxu1 %v197_v44 }
  0xe1   :  { %428 = vmatprep.subr.bf16.mxu1 %v196_v48 }
  0xe4   :  { %429 = vmatpush3.bf16.msra.mxu1 %v196_v48 }
  0xe5   :  { %430 = vmatprep.subr.bf16.mxu1 %v195_v51 }
  0xe8   :  { %431 = vmatpush3.bf16.msra.mxu1 %v195_v51 }
  0xe9   :  { %432 = vmatprep.subr.bf16.mxu1 %v194_v54 }
  0xec   :  { %433 = vmatpush3.bf16.msra.mxu1 %v194_v54 }
  0xef   :  { %435 = vmatmul.mubr.msk.bf16.vlgmr.msra.gmra.mxu1 %vm224_vm1, %v468_v55 }
 0x1af   :  { %v436_v62 = vpop.f32.mrf.mxu1 }
 0x1b0   :  { %v274_v0 = vadd.f32 %v436_v62, %v208_v61 }
 0x1b1   :  { %v265_v63 = vpop.f32.mrf.mxu1 }
 0x1b2   :  { %v282_v6 = vmax.f32 %v274_v0, 0.0  ;;  %v266_v7 = vadd.f32 %v265_v63, %v200_v1 }
 0x1b3   :  { %v437_v2 = vpop.f32.mrf.mxu1 }
 0x1b4   :  { %v277_v3 = vadd.f32 %v437_v2, %v212_v60  ;;  %v280_v12 = vmax.f32 %v266_v7, 0.0 }
 0x1b5   :  { %v268_v5 = vpop.f32.mrf.mxu1 }
 0x1b6   :  { %v283_v8 = vmax.f32 %v277_v3, 0.0  ;;  %v269_v9 = vadd.f32 %v268_v5, %v204_v4 }
 0x1b8   :  { %v287_v10 = vpack.c.bf16 %v283_v8, %v282_v6  ;;  %v281_v11 = vmax.f32 %v269_v9, 0.0 }
 0x1ba   :  { %439 = vmatpush3.bf16.msra.mxu0 %v287_v10  ;;  %v286_v13 = vpack.c.bf16 %v281_v11, %v280_v12 }
 0x1bb   :  { %440 = vmatprep.subr.bf16.mxu0 %v494_v56 }
 0x1be   :  { %441 = vmatpush3.bf16.msra.mxu0 %v286_v13 }
 0x1c1   :  { %443 = vmatmul.mubr.msk.bf16.vlgmr.msra.gmra.mxu0 %vm101_vm0, %v469_v14 }
 0x281   :  { %v338_v16 = vpop.f32.mrf.mxu0 }
 0x282   :  { %v339_v17 = vadd.f32 %v338_v16, %v290_v15 }
 0x283   :  { %v444_v19 = vpop.f32.mrf.mxu0 }
 0x284   :  { %v345_v21 = vmax.f32 %v339_v17, 0.0 }
 0x285   :  { %v341_v22 = vpop.f32.mrf.mxu0 }
 0x286   :  { %v342_v23 = vadd.f32 %v341_v22, %v294_v20  ;;  %v355_v25 = vmul.f32 %v349_v18, %v345_v21 }
 0x287   :  { %v445_v24 = vpop.f32.mrf.mxu0 }
 0x288   :  { %v346_v26 = vmax.f32 %v342_v23, 0.0  ;;  %v358_v29 = vsel %vm357_vm3, %v355_v25, 0.0 }
 0x28a   :  { %v356_v28 = vmul.f32 %v353_v27, %v346_v26 }
 0x28c   :  { %v359_v30 = vsel %vm357_vm3, %v356_v28, 0.0 }
 0x28d   :  { %v360_v31 = vadd.f32 %v359_v30, %v358_v29 }
 0x28f   :  { %v361_v32 = vrot.slane %v360_v31, 4 }
 0x291   :  { %v362_v33 = vadd.f32 %v361_v32, %v360_v31 }
 0x293   :  { %v363_v34 = vrot.slane %v362_v33, 2 }
 0x295   :  { %v364_v35 = vadd.f32 %v363_v34, %v362_v33 }
 0x297   :  { %v365_v36 = vrot.slane %v364_v35, 1 }
 0x299   :  { %v366_v38 = vadd.f32 %v365_v36, %v364_v35 }
 0x29b   :  { %v371_v39 = vadd.f32 %v369_v37, %v366_v38 }
 0x29d   :  { %373 = vst.msk [vmem:[#allocation2] sm:$0x1] %vm372_vm4, %v371_v39 }
 0x29e   :  { %481 = shalt.err (!%p478_p4)
}
 0x29f   :  { %383 = dma.vmem_to_hbm [thread:$0]  %s381_s23, 16, %s611_s5, [#allocation3]  }
 0x2a0   :  { %490 = dma.done.wait [#allocation3], 16  }
 0x2a1   :  { %491 = vsyncadd [#allocation3], 4294967280 }
 0x2a2   :  { %387 = vsyncpa [#allocation3], 1 }

</bundles_post_ra>
